<compile_context>
chip_gen: v7x
topology: tpu7x:2x2x1
jax: 0.10.0
libtpu: 0.0.40
codegen_flags: <defaults>
</compile_context>

<pallas_src>
import jax
import jax.numpy as jnp
from jax.experimental import pallas as pl
from jax.experimental.pallas import tpu as pltpu

F_IN = 10      # input features
F_HID1 = 10    # first hidden width
F_HID2 = 256   # second hidden width
F_OUT = 10     # output features
F_PAD = 128    # lane-padded width used only for WEIGHT layouts (loaded once)


def _round_up(n, m):
    return ((n + m - 1) // m) * m


def mlp_kernel(x_ref, w1_ref, b1_ref, w2_ref, b2_ref, w3_ref, b3_ref, o_ref):
    x = x_ref[...]                       # (TB, 10) f32, unpadded
    w1 = w1_ref[...]                     # (10, 128) f32; output cols 10..127 are zero

    # ---- Layer 1: Linear(10, 10) ----
    # K = 10 is tiny: contract on the VPU with 10 broadcast-FMAs instead of an
    # unaligned-K MXU matmul (this also avoids ever lane-padding x in VMEM).
    tb = x.shape[0]
    h = jnp.broadcast_to(b1_ref[...], (tb, F_PAD))         # (TB, 128), hoisted
    for i in range(F_IN):                                   # static unroll (10)
        h = h + x[:, i:i + 1] * w1[i:i + 1, :]

    # Dropout(0.3): identity in inference mode (module.eval()).
    # TODO(synk): training-mode dropout (pltpu.prng_seed/prng_random_bits mask
    #             + 1/0.7 rescale) not implemented.
    h = jnp.maximum(h, 0.0)                                 # ReLU

    # ---- Layer 2: Linear(10, 256) ----
    # Fully (8,128)-aligned bf16 MXU matmul; w2 rows 10..127 are zero so the
    # padded lanes of h contribute nothing (they are zero anyway).
    h = jnp.dot(h.astype(jnp.bfloat16), w2_ref[...],
                preferred_element_type=jnp.float32) + b2_ref[...]
    h = jnp.maximum(h, 0.0)                                 # ReLU

    # ---- Layer 3: Linear(256, 10) ----
    # Output dim padded to 128 for the MXU; only the 10 real lanes are stored
    # (10-lane masked VMEM store -> only 40 B/row of HBM writeback).
    out = jnp.dot(h.astype(jnp.bfloat16), w3_ref[...],
                  preferred_element_type=jnp.float32) + b3_ref[...]
    o_ref[...] = out[:, :F_OUT]


def prep_params(params):
    """One-time weight layout prep (outside the kernel, negligible HBM cost):
    pad weight feature dims to 128 lanes and cast the MXU weights to bf16."""
    w1, b1, w2, b2, w3, b3 = params
    w1_p = jnp.zeros((F_IN, F_PAD), jnp.float32).at[:, :F_HID1].set(w1)
    b1_p = jnp.zeros((1, F_PAD), jnp.float32).at[0, :F_HID1].set(b1)
    w2_p = jnp.zeros((F_PAD, F_HID2), jnp.bfloat16).at[:F_HID1, :].set(
        w2.astype(jnp.bfloat16))
    b2_p = b2.reshape(1, F_HID2).astype(jnp.float32)
    w3_p = jnp.zeros((F_HID2, F_PAD), jnp.bfloat16).at[:, :F_OUT].set(
        w3.astype(jnp.bfloat16))
    b3_p = jnp.zeros((1, F_PAD), jnp.float32).at[0, :F_OUT].set(b3)
    return (w1_p, b1_p, w2_p, b2_p, w3_p, b3_p)


def mlp_forward(x, prepped_params, *, tb_max=2048):
    """x: (B, 10).  prepped_params: output of prep_params().  Returns (B, 10) f32."""
    w1, b1, w2, b2, w3, b3 = prepped_params
    x = x.astype(jnp.float32)
    B = x.shape[0]

    # Batch tile: multiple of 8 sublanes; at least 2 grid steps when B > 8 so the
    # "parallel" batch axis spans both v7x TensorCores; capped at tb_max so the
    # per-step VMEM footprint stays well inside v7x's 64 MiB physical VMEM.
    tb = min(_round_up(tb_max, 8), _round_up(pl.cdiv(B, 2), 8))
    b_pad = _round_up(B, tb)
    grid = (b_pad // tb,)

    # Row-pad the batch to a multiple of tb (at most tb-1 zero rows); the 10-wide
    # feature dim is NOT padded anymore.
    if b_pad != B:
        x = jnp.zeros((b_pad, F_IN), jnp.float32).at[:B].set(x)

    row_in_spec = pl.BlockSpec((tb, F_IN), lambda i: (i, 0))
    row_out_spec = pl.BlockSpec((tb, F_OUT), lambda i: (i, 0))
    # Weights/biases: constant index map -> fetched once, VMEM-resident.
    resident = lambda a: pl.BlockSpec(a.shape, lambda i: (0, 0))

    nbytes = lambda a: a.size * a.dtype.itemsize
    cost = pl.CostEstimate(
        flops=2 * b_pad * (F_IN * F_HID1 + F_HID1 * F_HID2 + F_HID2 * F_OUT),
        transcendentals=0,
        bytes_accessed=(b_pad * F_IN * 4 + b_pad * F_OUT * 4
                        + sum(nbytes(a) for a in prepped_params)),
    )

    out = pl.pallas_call(
        mlp_kernel,
        out_shape=jax.ShapeDtypeStruct((b_pad, F_OUT), jnp.float32),
        grid=grid,
        in_specs=[row_in_spec,
                  resident(w1), resident(b1),
                  resident(w2), resident(b2),
                  resident(w3), resident(b3)],
        out_specs=row_out_spec,
        compiler_params=pltpu.CompilerParams(
            dimension_semantics=("parallel",),
            vmem_limit_bytes=48 * 1024 * 1024,
        ),
        cost_estimate=cost,
    )(x, w1, b1, w2, b2, w3, b3)

    return out[:B] if b_pad != B else out


def kaiming_uniform(key, fan_in, fan_out):
    # Matches the module's weight_init: nn.init.kaiming_uniform_(w) with defaults
    # (a=0, fan_in mode, leaky_relu gain=sqrt(2)); biases are zero-initialized.
    gain = jnp.sqrt(2.0)
    bound = gain * jnp.sqrt(3.0 / fan_in)
    # stored as (in_features, out_features), i.e. transposed vs. PyTorch layout
    return jax.random.uniform(key, (fan_in, fan_out), jnp.float32, -bound, bound)


def make_params(key):
    k1, k2, k3 = jax.random.split(key, 3)
    w1 = kaiming_uniform(k1, F_IN, F_HID1)
    b1 = jnp.zeros((F_HID1,), jnp.float32)
    w2 = kaiming_uniform(k2, F_HID1, F_HID2)
    b2 = jnp.zeros((F_HID2,), jnp.float32)
    w3 = kaiming_uniform(k3, F_HID2, F_OUT)
    b3 = jnp.zeros((F_OUT,), jnp.float32)
    return (w1, b1, w2, b2, w3, b3)


def reference(x, params):
    # Pure-f32 reference of the module's forward (Dropout in eval mode).
    w1, b1, w2, b2, w3, b3 = params
    hi = jax.lax.Precision.HIGHEST
    h = jnp.maximum(jnp.dot(x, w1, precision=hi) + b1, 0.0)
    h = jnp.maximum(jnp.dot(h, w2, precision=hi) + b2, 0.0)
    return jnp.dot(h, w3, precision=hi) + b3


if __name__ == "__main__":
    key = jax.random.PRNGKey(0)
    pkey, xkey1, xkey2 = jax.random.split(key, 3)
    params = make_params(pkey)
    prepped = prep_params(params)

    # Small sanity check (single grid step).
    x_small = jax.random.normal(xkey1, (8, F_IN), jnp.float32)
    out_small = mlp_forward(x_small, prepped)
    jax.block_until_ready(out_small)
    assert out_small.shape == (8, F_OUT)
    # Layers 2/3 use bf16 MXU operands -> loose tolerance vs. the f32 reference.
    assert jnp.allclose(out_small, reference(x_small, params), atol=1e-1, rtol=5e-2)

    # Multi-step grid + ragged batch (exercises batch tiling, row padding and the
    # >=2-grid-step / megacore path).
    x_big = jax.random.normal(xkey2, (300, F_IN), jnp.float32)
    out_big = mlp_forward(x_big, prepped, tb_max=128)
    jax.block_until_ready(out_big)
    assert out_big.shape == (300, F_OUT)
    assert jnp.allclose(out_big, reference(x_big, params), atol=1e-1, rtol=5e-2)

    print("KERNEL_OK")
</pallas_src>

<mosaic_0001>
module attributes {stable_mosaic.version = 11 : i64} {
  func.func @mlp_kernel(%arg0: i32, %arg1: memref<8x10xf32, #tpu.memory_space<vmem>>, %arg2: memref<10x128xf32, #tpu.memory_space<vmem>>, %arg3: memref<1x128xf32, #tpu.memory_space<vmem>>, %arg4: memref<128x256xbf16, #tpu.memory_space<vmem>>, %arg5: memref<1x256xf32, #tpu.memory_space<vmem>>, %arg6: memref<256x128xbf16, #tpu.memory_space<vmem>>, %arg7: memref<1x128xf32, #tpu.memory_space<vmem>>, %arg8: memref<8x10xf32, #tpu.memory_space<vmem>>) attributes {dimension_semantics = [#tpu.dimension_semantics<parallel>], iteration_bounds = array<i64: 1>, scalar_prefetch = 0 : i64, scratch_operands = 0 : i64, tpu.core_type = #tpu.core_type<tc>, window_params = [{transform_indices = @transform_0, window_bounds = array<i64: 8, 10>}, {pipeline_mode = #tpu.pipeline_mode<synchronous>, transform_indices = @transform_1, window_bounds = array<i64: 10, 128>}, {pipeline_mode = #tpu.pipeline_mode<synchronous>, transform_indices = @transform_2, window_bounds = array<i64: 1, 128>}, {pipeline_mode = #tpu.pipeline_mode<synchronous>, transform_indices = @transform_3, window_bounds = array<i64: 128, 256>}, {pipeline_mode = #tpu.pipeline_mode<synchronous>, transform_indices = @transform_4, window_bounds = array<i64: 1, 256>}, {pipeline_mode = #tpu.pipeline_mode<synchronous>, transform_indices = @transform_5, window_bounds = array<i64: 256, 128>}, {pipeline_mode = #tpu.pipeline_mode<synchronous>, transform_indices = @transform_6, window_bounds = array<i64: 1, 128>}, {transform_indices = @transform_7, window_bounds = array<i64: 8, 10>}]} {
    %c0 = arith.constant 0 : index
    %c0_0 = arith.constant 0 : index
    %0 = vector.load %arg1[%c0, %c0_0] : memref<8x10xf32, #tpu.memory_space<vmem>>, vector<8x10xf32>
    %c0_1 = arith.constant 0 : index
    %c0_2 = arith.constant 0 : index
    %1 = vector.load %arg2[%c0_1, %c0_2] : memref<10x128xf32, #tpu.memory_space<vmem>>, vector<10x128xf32>
    %c0_3 = arith.constant 0 : index
    %c0_4 = arith.constant 0 : index
    %2 = vector.load %arg3[%c0_3, %c0_4] : memref<1x128xf32, #tpu.memory_space<vmem>>, vector<1x128xf32>
    %3 = vector.shape_cast %2 : vector<1x128xf32> to vector<1x128xf32>
    %4 = vector.broadcast %3 : vector<1x128xf32> to vector<8x128xf32>
    %5 = vector.extract_strided_slice %0 {offsets = [0, 0], sizes = [8, 1], strides = [1, 1]} : vector<8x10xf32> to vector<8x1xf32>
    %6 = vector.extract_strided_slice %1 {offsets = [0, 0], sizes = [1, 128], strides = [1, 1]} : vector<10x128xf32> to vector<1x128xf32>
    %7 = vector.broadcast %5 : vector<8x1xf32> to vector<8x128xf32>
    %8 = vector.broadcast %6 : vector<1x128xf32> to vector<8x128xf32>
    %9 = arith.mulf %7, %8 : vector<8x128xf32>
    %10 = arith.addf %4, %9 : vector<8x128xf32>
    %11 = vector.extract_strided_slice %0 {offsets = [0, 1], sizes = [8, 1], strides = [1, 1]} : vector<8x10xf32> to vector<8x1xf32>
    %12 = vector.extract_strided_slice %1 {offsets = [1, 0], sizes = [1, 128], strides = [1, 1]} : vector<10x128xf32> to vector<1x128xf32>
    %13 = vector.broadcast %11 : vector<8x1xf32> to vector<8x128xf32>
    %14 = vector.broadcast %12 : vector<1x128xf32> to vector<8x128xf32>
    %15 = arith.mulf %13, %14 : vector<8x128xf32>
    %16 = arith.addf %10, %15 : vector<8x128xf32>
    %17 = vector.extract_strided_slice %0 {offsets = [0, 2], sizes = [8, 1], strides = [1, 1]} : vector<8x10xf32> to vector<8x1xf32>
    %18 = vector.extract_strided_slice %1 {offsets = [2, 0], sizes = [1, 128], strides = [1, 1]} : vector<10x128xf32> to vector<1x128xf32>
    %19 = vector.broadcast %17 : vector<8x1xf32> to vector<8x128xf32>
    %20 = vector.broadcast %18 : vector<1x128xf32> to vector<8x128xf32>
    %21 = arith.mulf %19, %20 : vector<8x128xf32>
    %22 = arith.addf %16, %21 : vector<8x128xf32>
    %23 = vector.extract_strided_slice %0 {offsets = [0, 3], sizes = [8, 1], strides = [1, 1]} : vector<8x10xf32> to vector<8x1xf32>
    %24 = vector.extract_strided_slice %1 {offsets = [3, 0], sizes = [1, 128], strides = [1, 1]} : vector<10x128xf32> to vector<1x128xf32>
    %25 = vector.broadcast %23 : vector<8x1xf32> to vector<8x128xf32>
    %26 = vector.broadcast %24 : vector<1x128xf32> to vector<8x128xf32>
    %27 = arith.mulf %25, %26 : vector<8x128xf32>
    %28 = arith.addf %22, %27 : vector<8x128xf32>
    %29 = vector.extract_strided_slice %0 {offsets = [0, 4], sizes = [8, 1], strides = [1, 1]} : vector<8x10xf32> to vector<8x1xf32>
    %30 = vector.extract_strided_slice %1 {offsets = [4, 0], sizes = [1, 128], strides = [1, 1]} : vector<10x128xf32> to vector<1x128xf32>
    %31 = vector.broadcast %29 : vector<8x1xf32> to vector<8x128xf32>
    %32 = vector.broadcast %30 : vector<1x128xf32> to vector<8x128xf32>
    %33 = arith.mulf %31, %32 : vector<8x128xf32>
    %34 = arith.addf %28, %33 : vector<8x128xf32>
    %35 = vector.extract_strided_slice %0 {offsets = [0, 5], sizes = [8, 1], strides = [1, 1]} : vector<8x10xf32> to vector<8x1xf32>
    %36 = vector.extract_strided_slice %1 {offsets = [5, 0], sizes = [1, 128], strides = [1, 1]} : vector<10x128xf32> to vector<1x128xf32>
    %37 = vector.broadcast %35 : vector<8x1xf32> to vector<8x128xf32>
    %38 = vector.broadcast %36 : vector<1x128xf32> to vector<8x128xf32>
    %39 = arith.mulf %37, %38 : vector<8x128xf32>
    %40 = arith.addf %34, %39 : vector<8x128xf32>
    %41 = vector.extract_strided_slice %0 {offsets = [0, 6], sizes = [8, 1], strides = [1, 1]} : vector<8x10xf32> to vector<8x1xf32>
    %42 = vector.extract_strided_slice %1 {offsets = [6, 0], sizes = [1, 128], strides = [1, 1]} : vector<10x128xf32> to vector<1x128xf32>
    %43 = vector.broadcast %41 : vector<8x1xf32> to vector<8x128xf32>
    %44 = vector.broadcast %42 : vector<1x128xf32> to vector<8x128xf32>
    %45 = arith.mulf %43, %44 : vector<8x128xf32>
    %46 = arith.addf %40, %45 : vector<8x128xf32>
    %47 = vector.extract_strided_slice %0 {offsets = [0, 7], sizes = [8, 1], strides = [1, 1]} : vector<8x10xf32> to vector<8x1xf32>
    %48 = vector.extract_strided_slice %1 {offsets = [7, 0], sizes = [1, 128], strides = [1, 1]} : vector<10x128xf32> to vector<1x128xf32>
    %49 = vector.broadcast %47 : vector<8x1xf32> to vector<8x128xf32>
    %50 = vector.broadcast %48 : vector<1x128xf32> to vector<8x128xf32>
    %51 = arith.mulf %49, %50 : vector<8x128xf32>
    %52 = arith.addf %46, %51 : vector<8x128xf32>
    %53 = vector.extract_strided_slice %0 {offsets = [0, 8], sizes = [8, 1], strides = [1, 1]} : vector<8x10xf32> to vector<8x1xf32>
    %54 = vector.extract_strided_slice %1 {offsets = [8, 0], sizes = [1, 128], strides = [1, 1]} : vector<10x128xf32> to vector<1x128xf32>
    %55 = vector.broadcast %53 : vector<8x1xf32> to vector<8x128xf32>
    %56 = vector.broadcast %54 : vector<1x128xf32> to vector<8x128xf32>
    %57 = arith.mulf %55, %56 : vector<8x128xf32>
    %58 = arith.addf %52, %57 : vector<8x128xf32>
    %59 = vector.extract_strided_slice %0 {offsets = [0, 9], sizes = [8, 1], strides = [1, 1]} : vector<8x10xf32> to vector<8x1xf32>
    %60 = vector.extract_strided_slice %1 {offsets = [9, 0], sizes = [1, 128], strides = [1, 1]} : vector<10x128xf32> to vector<1x128xf32>
    %61 = vector.broadcast %59 : vector<8x1xf32> to vector<8x128xf32>
    %62 = vector.broadcast %60 : vector<1x128xf32> to vector<8x128xf32>
    %63 = arith.mulf %61, %62 : vector<8x128xf32>
    %64 = arith.addf %58, %63 : vector<8x128xf32>
    %cst = arith.constant 0.000000e+00 : f32
    %65 = vector.broadcast %cst : f32 to vector<8x128xf32>
    %66 = arith.maximumf %64, %65 : vector<8x128xf32>
    %67 = arith.truncf %66 : vector<8x128xf32> to vector<8x128xbf16>
    %c0_5 = arith.constant 0 : index
    %c0_6 = arith.constant 0 : index
    %68 = vector.load %arg4[%c0_5, %c0_6] : memref<128x256xbf16, #tpu.memory_space<vmem>>, vector<128x256xbf16>
    %cst_7 = arith.constant dense<0.000000e+00> : vector<8x256xf32>
    %69 = tpu.matmul %67, %68, %cst_7 {dimension_numbers = #tpu.dot_dimension_numbers<[1], [0], [0], [1], [0, 0, 1, 1], [], []>} : vector<8x128xbf16>, vector<128x256xbf16>, vector<8x256xf32> -> vector<8x256xf32>
    %c0_8 = arith.constant 0 : index
    %c0_9 = arith.constant 0 : index
    %70 = vector.load %arg5[%c0_8, %c0_9] : memref<1x256xf32, #tpu.memory_space<vmem>>, vector<1x256xf32>
    %71 = vector.broadcast %70 : vector<1x256xf32> to vector<8x256xf32>
    %72 = arith.addf %69, %71 : vector<8x256xf32>
    %cst_10 = arith.constant 0.000000e+00 : f32
    %73 = vector.broadcast %cst_10 : f32 to vector<8x256xf32>
    %74 = arith.maximumf %72, %73 : vector<8x256xf32>
    %75 = arith.truncf %74 : vector<8x256xf32> to vector<8x256xbf16>
    %c0_11 = arith.constant 0 : index
    %c0_12 = arith.constant 0 : index
    %76 = vector.load %arg6[%c0_11, %c0_12] : memref<256x128xbf16, #tpu.memory_space<vmem>>, vector<256x128xbf16>
    %cst_13 = arith.constant dense<0.000000e+00> : vector<8x128xf32>
    %77 = tpu.matmul %75, %76, %cst_13 {dimension_numbers = #tpu.dot_dimension_numbers<[1], [0], [0], [1], [0, 0, 1, 1], [], []>} : vector<8x256xbf16>, vector<256x128xbf16>, vector<8x128xf32> -> vector<8x128xf32>
    %c0_14 = arith.constant 0 : index
    %c0_15 = arith.constant 0 : index
    %78 = vector.load %arg7[%c0_14, %c0_15] : memref<1x128xf32, #tpu.memory_space<vmem>>, vector<1x128xf32>
    %79 = vector.broadcast %78 : vector<1x128xf32> to vector<8x128xf32>
    %80 = arith.addf %77, %79 : vector<8x128xf32>
    %81 = vector.extract_strided_slice %80 {offsets = [0, 0], sizes = [8, 10], strides = [1, 1]} : vector<8x128xf32> to vector<8x10xf32>
    %c0_16 = arith.constant 0 : index
    %c0_17 = arith.constant 0 : index
    %82 = vector.load %arg8[%c0_16, %c0_17] : memref<8x10xf32, #tpu.memory_space<vmem>>, vector<8x10xf32>
    tpu.vector_store %arg8[%c0_16, %c0_17], %81 {strides = array<i32>} : memref<8x10xf32, #tpu.memory_space<vmem>>, vector<8x10xf32>,
    return
  }
  func.func @transform_0(%arg0: i32) -> (i32, i32) {
    %c0_i32 = arith.constant 0 : i32
    %c0_i32_0 = arith.constant 0 : i32
    return %arg0, %c0_i32 : i32, i32
  }
  func.func @transform_1(%arg0: i32) -> (i32, i32) {
    %c0_i32 = arith.constant 0 : i32
    %c0_i32_0 = arith.constant 0 : i32
    %c0_i32_1 = arith.constant 0 : i32
    return %c0_i32, %c0_i32_0 : i32, i32
  }
  func.func @transform_2(%arg0: i32) -> (i32, i32) {
    %c0_i32 = arith.constant 0 : i32
    %c0_i32_0 = arith.constant 0 : i32
    %c0_i32_1 = arith.constant 0 : i32
    return %c0_i32, %c0_i32_0 : i32, i32
  }
  func.func @transform_3(%arg0: i32) -> (i32, i32) {
    %c0_i32 = arith.constant 0 : i32
    %c0_i32_0 = arith.constant 0 : i32
    %c0_i32_1 = arith.constant 0 : i32
    return %c0_i32, %c0_i32_0 : i32, i32
  }
  func.func @transform_4(%arg0: i32) -> (i32, i32) {
    %c0_i32 = arith.constant 0 : i32
    %c0_i32_0 = arith.constant 0 : i32
    %c0_i32_1 = arith.constant 0 : i32
    return %c0_i32, %c0_i32_0 : i32, i32
  }
  func.func @transform_5(%arg0: i32) -> (i32, i32) {
    %c0_i32 = arith.constant 0 : i32
    %c0_i32_0 = arith.constant 0 : i32
    %c0_i32_1 = arith.constant 0 : i32
    return %c0_i32, %c0_i32_0 : i32, i32
  }
  func.func @transform_6(%arg0: i32) -> (i32, i32) {
    %c0_i32 = arith.constant 0 : i32
    %c0_i32_0 = arith.constant 0 : i32
    %c0_i32_1 = arith.constant 0 : i32
    return %c0_i32, %c0_i32_0 : i32, i32
  }
  func.func @transform_7(%arg0: i32) -> (i32, i32) {
    %c0_i32 = arith.constant 0 : i32
    %c0_i32_0 = arith.constant 0 : i32
    return %arg0, %c0_i32 : i32, i32
  }
}

</mosaic_0001>

<bundles_post_ra>
// kernel: tpu_custom_call.1
= control target key start
LH: loop header
LB: loop body
LE: loop exit
PB: predicated region body
PF: predicated region fallthrough
CT: control target
= control target key end

     0   :  { %12 = vsyncpa [#allocation3], 0  ;;  %s929_s0 = inlined_call_operand.hbm [shape: f32[8,10], index: 0, kind: input, shape index: {}]   ;;  %s930_s1 = inlined_call_operand.hbm [shape: f32[10,128], index: 1, kind: input, shape index: {}]   ;;  %s931_s2 = inlined_call_operand.vmem [shape: f32[1,128], index: 2, kind: input, shape index: {}]   ;;  %s932_s3 = inlined_call_operand.hbm [shape: bf16[128,256], index: 3, kind: input, shape index: {}]   ;;  %s933_s4 = inlined_call_operand.vmem [shape: f32[1,256], index: 4, kind: input, shape index: {}]   ;;  %s934_s5 = inlined_call_operand.hbm [shape: bf16[256,128], index: 5, kind: input, shape index: {}]   ;;  %s935_s6 = inlined_call_operand.vmem [shape: f32[1,128], index: 6, kind: input, shape index: {}]   ;;  %s936_s7 = inlined_call_operand.hbm [shape: f32[8,10], index: 7, kind: output, shape index: {}]  }
   0x1   :  { %13 = vsyncpa [#allocation6], 0 }
   0x2   :  { %14 = vsyncpa [#allocation9], 0 }
   0x3   :  { %15 = vsyncpa [#allocation4], 0  ;;  %s785_s24 = smov [#allocation5]   ;;  %s667_s28 = scalar_lea.hbm %s930_s1, 256 }
   0x4   :  { %s31_s25 = sshll.u32 %s785_s24, 4  ;;  %p668_p0 = scmp.ne.s32.totalorder %s930_s1, %s667_s28  ;;  %s32_s25 = int_to_ptr.vmem [resolvable:$true] %s31_s25 }
   0x5   :  { %p671_p1 = scmp.lt.u32.totalorder %s667_s28, %s930_s1 }
   0x7   :  { %p673_p2 = pnand %p671_p1, %p668_p0 }
   0x9   :  { %676 = shalt.err (!%p673_p2)
}
   0xa   :  { %s677_s10 = scalar_lea.vmem %s32_s25, 256  ;;  %p682_p4 = scmp.lt.s32.totalorder %s32_s25, %s32_s25 }
   0xb   :  { %p678_p3 = scmp.ne.s32.totalorder %s32_s25, %s677_s10  ;;  %p683_p5 = scmp.lt.s32.totalorder %s677_s10, %s677_s10 }
   0xd   :  { %p684_p6 = por %p683_p5, %p682_p4 }
   0xf   :  { %p685_p7 = pnand %p684_p6, %p678_p3 }
  0x11   :  { %688 = shalt.err (!%p685_p7)
}
  0x12   :  { %s786_s11 = smov 128   ;;  %s787_s12 = smov 8  }
  0x13   :  { %37 = dma.hbm_to_vmem [thread:$0]  %s930_s1, 256, %s32_s25, [#allocation6], %s786_s11, %s786_s11, %s787_s12  }
  0x14   :  { %s788_s15 = smov [#allocation2]   ;;  %s789_s17 = smov [#allocation7]  }
  0x15   :  { %s22_s16 = sshll.u32 %s788_s15, 4  ;;  %s45_s18 = sshll.u32 %s789_s17, 4  ;;  %s23_s16 = int_to_ptr.vmem [resolvable:$true] %s22_s16  ;;  %s46_s18 = int_to_ptr.vmem [resolvable:$true] %s45_s18 }
  0x16   :  { %s689_s21 = scalar_lea.hbm %s929_s0, 128 }
  0x17   :  { %p690_p8 = scmp.ne.s32.totalorder %s929_s0, %s689_s21  ;;  %p693_p9 = scmp.lt.u32.totalorder %s689_s21, %s929_s0 }
  0x19   :  { %p695_p10 = pnand %p693_p9, %p690_p8 }
  0x1b   :  { %698 = shalt.err (!%p695_p10)
}
  0x1c   :  { %s699_s1 = scalar_lea.vmem %s23_s16, 128  ;;  %p704_p12 = scmp.lt.s32.totalorder %s23_s16, %s23_s16 }
  0x1d   :  { %p700_p11 = scmp.ne.s32.totalorder %s23_s16, %s699_s1  ;;  %p705_p13 = scmp.lt.s32.totalorder %s699_s1, %s699_s1 }
  0x1f   :  { %p706_p0 = por %p705_p13, %p704_p12 }
  0x21   :  { %p707_p1 = pnand %p706_p0, %p700_p11 }
  0x23   :  { %710 = shalt.err (!%p707_p1)
}
  0x24   :  { %25 = dma.hbm_to_vmem [thread:$0]  %s929_s0, 128, %s23_s16, [#allocation3]  }
  0x25   :  { %s711_s30 = scalar_lea.hbm %s932_s3, 2048 }
  0x26   :  { %p712_p2 = scmp.ne.s32.totalorder %s932_s3, %s711_s30  ;;  %p715_p3 = scmp.lt.u32.totalorder %s711_s30, %s932_s3 }
  0x28   :  { %p717_p4 = pnand %p715_p3, %p712_p2 }
  0x2a   :  { %720 = shalt.err (!%p717_p4)
}
  0x2b   :  { %s721_s14 = scalar_lea.vmem %s46_s18, 2048  ;;  %p726_p6 = scmp.lt.s32.totalorder %s46_s18, %s46_s18 }
  0x2c   :  { %p722_p5 = scmp.ne.s32.totalorder %s46_s18, %s721_s14  ;;  %p727_p7 = scmp.lt.s32.totalorder %s721_s14, %s721_s14 }
  0x2e   :  { %p728_p8 = por %p727_p7, %p726_p6 }
  0x30   :  { %p729_p9 = pnand %p728_p8, %p722_p5 }
  0x32   :  { %732 = shalt.err (!%p729_p9)
}
  0x33   :  { %51 = dma.hbm_to_vmem [thread:$0]  %s932_s3, 2048, %s46_s18, [#allocation6], %s786_s11, %s786_s11, %s787_s12  }
  0x34   :  { %s790_s16 = smov [#allocation8]   ;;  %s733_s21 = scalar_lea.hbm %s934_s5, 2048 }
  0x35   :  { %s59_s17 = sshll.u32 %s790_s16, 4  ;;  %p734_p10 = scmp.ne.s32.totalorder %s934_s5, %s733_s21  ;;  %s60_s17 = int_to_ptr.vmem [resolvable:$true] %s59_s17 }
  0x36   :  { %p737_p11 = scmp.lt.u32.totalorder %s733_s21, %s934_s5 }
  0x38   :  { %p739_p12 = pnand %p737_p11, %p734_p10 }
  0x3a   :  { %742 = shalt.err (!%p739_p12)
}
  0x3b   :  { %s743_s1 = scalar_lea.vmem %s60_s17, 2048  ;;  %p748_p0 = scmp.lt.s32.totalorder %s60_s17, %s60_s17 }
  0x3c   :  { %p744_p13 = scmp.ne.s32.totalorder %s60_s17, %s743_s1  ;;  %p749_p1 = scmp.lt.s32.totalorder %s743_s1, %s743_s1 }
  0x3e   :  { %p750_p2 = por %p749_p1, %p748_p0 }
  0x40   :  { %p751_p3 = pnand %p750_p2, %p744_p13 }
  0x42   :  { %754 = shalt.err (!%p751_p3)
}
  0x43   :  { %s791_s3 = smov 64   ;;  %s792_s11 = smov 4  }
  0x44   :  { %65 = dma.hbm_to_vmem [thread:$0]  %s934_s5, 2048, %s60_s17, [#allocation9], %s791_s3, %s791_s3, %s792_s11  }
  0x45   :  { %777 = dma.done.wait [#allocation3], 128  }
  0x46   :  { %778 = vsyncadd [#allocation3], 4294967168 }
  0x47   :  { %779 = dma.done.wait [#allocation6], 2304  }
  0x48   :  { %780 = vsyncadd [#allocation6], 4294964992 }
  0x49   :  { %781 = dma.done.wait [#allocation9], 2048  }
  0x4a   :  { %782 = vsyncadd [#allocation9], 4294965248  ;;  %v793_v0 = vmov 2   ;;  %v794_v1 = vmov 0   ;;  %v81_v2 = vld [vmem:[#allocation2] sm:$0xff]  ;;  %v795_v6 = vmov 3   ;;  %v96_v39 = vlaneseq }
  0x4b   :  { %618 = vset.pattern.permute.xlu1 %v793_v0  ;;  %616 = vset.pattern.permute.xlu0 %v794_v1  ;;  %v627_v3 = vld [vmem:[#allocation7 + $0x4] ss:$8 sps:$4 sm:$0xff]   ;;  %v629_v4 = vld [vmem:[#allocation7] ss:$8 sps:$4 sm:$0xff]   ;;  %v630_v5 = vld [vmem:[#allocation7 + $0x14] ss:$8 sps:$4 sm:$0xff]  }
  0x4c   :  { %334 = vmatprep.mubr.bf16.mxu0 %v794_v1  ;;  %113 = vperm.xlu1 %618, %v81_v2   ;;  %v796_v7 = vmov 1   ;;  %v632_v8 = vld [vmem:[#allocation7 + $0x10] ss:$8 sps:$4 sm:$0xff]   ;;  %v633_v9 = vld [vmem:[#allocation7 + $0x24] ss:$8 sps:$4 sm:$0xff]   ;;  %v797_v11 = vmov 4  }
  0x4d   :  { %93 = vperm.xlu0 %616, %v81_v2   ;;  %302 = vmatprep.subr.bf16.mxu0 %v627_v3  ;;  %v635_v10 = vld [vmem:[#allocation7 + $0x20] ss:$8 sps:$4 sm:$0xff]   ;;  %v798_v12 = vmov 5   ;;  %v636_v13 = vld [vmem:[#allocation7 + $0x34] ss:$8 sps:$4 sm:$0xff]   ;;  %v799_v15 = vmov 6  }
  0x4e   :  { %303 = vmatpush1.bf16.msra.mxu0 %v629_v4  ;;  %v638_v14 = vld [vmem:[#allocation7 + $0x30] ss:$8 sps:$4 sm:$0xff]   ;;  %v800_v16 = vmov 8   ;;  %v639_v17 = vld [vmem:[#allocation7 + $0x44] ss:$8 sps:$4 sm:$0xff]   ;;  %v801_v19 = vmov 7  }
  0x4f   :  { %304 = vmatprep.subr.bf16.mxu0 %v630_v5  ;;  %v641_v18 = vld [vmem:[#allocation7 + $0x40] ss:$8 sps:$4 sm:$0xff]   ;;  %v642_v20 = vld [vmem:[#allocation7 + $0x54] ss:$8 sps:$4 sm:$0xff]   ;;  %v802_v21 = vmov 9   ;;  %v97_v40 = vshrl.u32 %v96_v39, 7 }
  0x50   :  { %619 = vset.pattern.permute.xlu1 %v795_v6  ;;  %v644_v22 = vld [vmem:[#allocation7 + $0x50] ss:$8 sps:$4 sm:$0xff]   ;;  %v645_v23 = vld [vmem:[#allocation7 + $0x64] ss:$8 sps:$4 sm:$0xff]   ;;  %v647_v24 = vld [vmem:[#allocation7 + $0x60] ss:$8 sps:$4 sm:$0xff]  }
  0x51   :  { %617 = vset.pattern.permute.xlu0 %v796_v7  ;;  %123 = vperm.xlu1 %619, %v81_v2   ;;  %v648_v25 = vld [vmem:[#allocation7 + $0x74] ss:$8 sps:$4 sm:$0xff]   ;;  %v650_v26 = vld [vmem:[#allocation7 + $0x70] ss:$8 sps:$4 sm:$0xff]   ;;  %v651_v27 = vld [vmem:[#allocation8 + $0x40] sm:$0xff]   ;;  %v898_v41 = vsub.s32 0, %v97_v40 }
  0x52   :  { %103 = vperm.xlu0 %617, %v81_v2   ;;  %305 = vmatpush1.bf16.msra.mxu0 %v632_v8  ;;  %v652_v28 = vld [vmem:[#allocation8] sm:$0xff]   ;;  %v653_v29 = vld [vmem:[#allocation8 + $0x48] sm:$0xff]   ;;  %v655_v31 = vld [vmem:[#allocation8 + $0x50] sm:$0xff]   ;;  %v901_v44 = vsub.s32 1, %v97_v40  ;;  %v118_v45 = vsub.s32 2, %v97_v40  ;;  %v128_v50 = vsub.s32 3, %v97_v40 }
  0x53   :  { %306 = vmatprep.subr.bf16.mxu0 %v633_v9  ;;  %575 = vmatprep.subr.bf16.mxu1 %v651_v27  ;;  %v654_v30 = vld [vmem:[#allocation8 + $0x8] sm:$0xff]   ;;  %v656_v32 = vld [vmem:[#allocation8 + $0x10] sm:$0xff]   ;;  %v657_v33 = vld [vmem:[#allocation8 + $0x58] sm:$0xff]   ;;  %v138_v52 = vsub.s32 4, %v97_v40  ;;  %v148_v57 = vsub.s32 5, %v97_v40  ;;  %v158_v0 = vsub.s32 6, %v97_v40 }
  0x54   :  { %576 = vmatpush3.bf16.msra.mxu1 %v652_v28  ;;  %v658_v34 = vld [vmem:[#allocation8 + $0x18] sm:$0xff]   ;;  %v659_v35 = vld [vmem:[#allocation8 + $0x60] sm:$0xff]   ;;  %v661_v37 = vld [vmem:[#allocation8 + $0x68] sm:$0xff]   ;;  %v168_v9 = vsub.s32 7, %v97_v40  ;;  %vm522_vm0 = vcmask 80896  }
  0x55   :  { %620 = vset.pattern.permute.xlu1 %v797_v11  ;;  %577 = vmatprep.subr.bf16.mxu1 %v653_v29  ;;  %v660_v36 = vld [vmem:[#allocation8 + $0x20] sm:$0xff]   ;;  %v662_v38 = vld [vmem:[#allocation8 + $0x28] sm:$0xff]   ;;  %v82_v42 = vld [vmem:[#allocation5] sm:$0xff] }
  0x56   :  { %621 = vset.pattern.permute.xlu0 %v798_v12  ;;  %133 = vperm.xlu1 %620, %v81_v2   ;;  %v99_v43 = vrot.slane %v82_v42, %v898_v41  ;;  %v541_v48 = vld [vmem:[%s931_s2] ss:$0 sm:$0xff]  ;;  %v109_v51 = vrot.slane %v82_v42, %v901_v44  ;;  %v119_v53 = vrot.slane %v82_v42, %v118_v45  ;;  %v83_v11 = vld [vmem:[#allocation5 + $0x8] sm:$0x3] }
  0x57   :  { %143 = vperm.xlu0 %621, %v81_v2   ;;  %307 = vmatpush1.bf16.msra.mxu0 %v635_v10  ;;  %v129_v58 = vrot.slane %v82_v42, %v128_v50  ;;  %v139_v60 = vrot.slane %v82_v42, %v138_v52  ;;  %v149_v63 = vrot.slane %v82_v42, %v148_v57  ;;  %v558_v50 = vld [vmem:[%s935_s6] ss:$0 sm:$0xff] }
  0x58   :  { %308 = vmatprep.subr.bf16.mxu0 %v636_v13  ;;  %578 = vmatpush3.bf16.msra.mxu1 %v654_v30  ;;  %v159_v8 = vrot.slane %v82_v42, %v158_v0  ;;  %v663_v30 = vld [vmem:[#allocation8 + $0x70] sm:$0xff]  }
  0x59   :  { %579 = vmatprep.subr.bf16.mxu1 %v655_v31  ;;  %v664_v31 = vld [vmem:[#allocation8 + $0x30] sm:$0xff]  }
  0x5a   :  { %622 = vset.pattern.permute.xlu1 %v799_v15  ;;  %v169_v15 = vrot.slane %v82_v42, %v168_v9 }
  0x5b   :  { %624 = vset.pattern.permute.xlu0 %v800_v16  ;;  %153 = vperm.xlu1 %622, %v81_v2   ;;  %v179_v16 = vrot.slane %v83_v11, %v898_v41 }
  0x5c   :  { %173 = vperm.xlu0 %624, %v81_v2   ;;  %309 = vmatpush1.bf16.msra.mxu0 %v638_v14 }
  0x5d   :  { %310 = vmatprep.subr.bf16.mxu0 %v639_v17  ;;  %580 = vmatpush3.bf16.msra.mxu1 %v656_v32  ;;  %v665_v32 = vld [vmem:[#allocation8 + $0x78] sm:$0xff]  }
  0x5e   :  { %581 = vmatprep.subr.bf16.mxu1 %v657_v33  ;;  %v666_v33 = vld [vmem:[#allocation8 + $0x38] sm:$0xff]  }
  0x5f   :  { %623 = vset.pattern.permute.xlu1 %v801_v19 }
  0x60   :  { %626 = vset.pattern.permute.xlu0 %v802_v21  ;;  %163 = vperm.xlu1 %623, %v81_v2  }
  0x61   :  { %311 = vmatpush1.bf16.msra.mxu0 %v641_v18  ;;  %582 = vmatpush3.bf16.msra.mxu1 %v658_v34  ;;  %v210_v34 = vld [vmem:[%s933_s4] sm:$0x3]  ;;  %s803_s4 = smov [#allocation10]  }
  0x62   :  { %312 = vmatprep.subr.bf16.mxu0 %v642_v20  ;;  %583 = vmatprep.subr.bf16.mxu1 %v659_v35  ;;  %v215_v35 = vrot.slane %v210_v34, %v898_v41  ;;  %s530_s30 = sshll.u32 %s803_s4, 4  ;;  %s531_s30 = int_to_ptr.vmem [resolvable:$true] %s530_s30 }
  0x63   :  { %s755_s8 = scalar_lea.vmem %s531_s30, 128  ;;  %p760_p5 = scmp.lt.s32.totalorder %s531_s30, %s531_s30 }
  0x64   :  { %625 = vset.pattern.permute.xlu1 %v802_v21  ;;  %p756_p4 = scmp.ne.s32.totalorder %s531_s30, %s755_s8  ;;  %p761_p6 = scmp.lt.s32.totalorder %s755_s8, %s755_s8 }
  0x65   :  { %313 = vmatpush1.bf16.msra.mxu0 %v644_v22  ;;  %183 = vperm.xlu1 %625, %v81_v2   ;;  %v189_v22 = vrot.slane %v83_v11, %v901_v44 }
  0x66   :  { %314 = vmatprep.subr.bf16.mxu0 %v645_v23  ;;  %584 = vmatpush3.bf16.msra.mxu1 %v660_v36  ;;  %v219_v36 = vrot.slane %v210_v34, %v901_v44  ;;  %p762_p7 = por %p761_p6, %p760_p5 }
  0x67   :  { %585 = vmatprep.subr.bf16.mxu1 %v661_v37 }
  0x68   :  { %p763_p8 = pnand %p762_p7, %p756_p4 }
  0x69   :  { %315 = vmatpush1.bf16.msra.mxu0 %v647_v24 }
  0x6a   :  { %316 = vmatprep.subr.bf16.mxu0 %v648_v25  ;;  %586 = vmatpush3.bf16.msra.mxu1 %v662_v38 }
  0x6b   :  { %587 = vmatprep.subr.bf16.mxu1 %v663_v30 }
  0x6d   :  { %317 = vmatpush1.bf16.msra.mxu0 %v650_v26 }
  0x6e   :  { %588 = vmatpush3.bf16.msra.mxu1 %v664_v31 }
  0x6f   :  { %589 = vmatprep.subr.bf16.mxu1 %v665_v32 }
  0x72   :  { %590 = vmatpush3.bf16.msra.mxu1 %v666_v33 }
  0xcb   :  { %v114_v46 = vpop.permute.xlu1 %113 }
  0xcc   :  { %v94_v47 = vpop.permute.xlu0 %93  ;;  %v120_v61 = vmul.f32 %v119_v53, %v114_v46 }
  0xcd   :  { %v100_v49 = vmul.f32 %v99_v43, %v94_v47 }
  0xcf   :  { %v101_v54 = vadd.f32 %v541_v48, %v100_v49 }
  0xd0   :  { %v124_v55 = vpop.permute.xlu1 %123 }
  0xd1   :  { %v104_v56 = vpop.permute.xlu0 %103  ;;  %v130_v1 = vmul.f32 %v129_v58, %v124_v55 }
  0xd2   :  { %v110_v59 = vmul.f32 %v109_v51, %v104_v56 }
  0xd4   :  { %v111_v62 = vadd.f32 %v110_v59, %v101_v54 }
  0xd5   :  { %v134_v3 = vpop.permute.xlu1 %133 }
  0xd6   :  { %v121_v2 = vadd.f32 %v120_v61, %v111_v62  ;;  %v144_v4 = vpop.permute.xlu0 %143  ;;  %v140_v5 = vmul.f32 %v139_v60, %v134_v3 }
  0xd7   :  { %v150_v7 = vmul.f32 %v149_v63, %v144_v4 }
  0xd8   :  { %v131_v6 = vadd.f32 %v130_v1, %v121_v2 }
  0xda   :  { %v141_v10 = vadd.f32 %v140_v5, %v131_v6  ;;  %v154_v12 = vpop.permute.xlu1 %153 }
  0xdb   :  { %v160_v14 = vmul.f32 %v159_v8, %v154_v12  ;;  %v174_v17 = vpop.permute.xlu0 %173 }
  0xdc   :  { %v151_v13 = vadd.f32 %v150_v7, %v141_v10  ;;  %v180_v21 = vmul.f32 %v179_v16, %v174_v17 }
  0xde   :  { %v161_v19 = vadd.f32 %v160_v14, %v151_v13 }
  0xdf   :  { %v164_v18 = vpop.permute.xlu1 %163 }
  0xe0   :  { %v170_v20 = vmul.f32 %v169_v15, %v164_v18 }
  0xe2   :  { %v171_v23 = vadd.f32 %v170_v20, %v161_v19 }
  0xe4   :  { %v181_v24 = vadd.f32 %v180_v21, %v171_v23  ;;  %v184_v25 = vpop.permute.xlu1 %183 }
  0xe5   :  { %v190_v26 = vmul.f32 %v189_v22, %v184_v25 }
  0xe7   :  { %v191_v27 = vadd.f32 %v190_v26, %v181_v24 }
  0xe9   :  { %v192_v28 = vmax.f32 %v191_v27, 0.0 }
  0xeb   :  { %v193_v29 = vpack.c.bf16 %v192_v28, %v192_v28 }
  0xed   :  { %335 = vmatmul.mubr.bf16.vlgmr.msra.gmra.mrb[0].mxu0 %v193_v29 }
 0x1c0   :  { %v336_v37 = vpop.f32.mrb[0].mxu0 }
 0x1c1   :  { %v337_v38 = vadd.f32 %v336_v37, %v215_v35  ;;  %v338_v39 = vpop.f32.mrb[1].mxu0 }
 0x1c2   :  { %v339_v40 = vadd.f32 %v338_v39, %v219_v36  ;;  %v340_v42 = vpop.f32.mrb[2].mxu0 }
 0x1c3   :  { %v343_v43 = vmax.f32 %v337_v38, 0.0  ;;  %v341_v45 = vpop.f32.mrb[3].mxu0 }
 0x1c4   :  { %v344_v46 = vmax.f32 %v339_v40, 0.0 }
 0x1c5   :  { %v345_v48 = vpack.c.bf16 %v343_v43, %v343_v43 }
 0x1c6   :  { %v346_v47 = vpack.c.bf16 %v344_v46, %v344_v46 }
 0x1c8   :  { %514 = vmatprep.mubr.bf16.mxu1 %v346_v47 }
 0x1c9   :  { %515 = vmatmul.mubr.bf16.vlgmr.msra.gmra.mrb[0].mxu1 %v345_v48 }
 0x29c   :  { %v591_v49 = vpop.f32.mrb[0].mxu1 }
 0x29d   :  { %v592_v41 = vpop.f32.mrb[1].mxu1 }
 0x29e   :  { %v593_v44 = vadd.f32 %v592_v41, %v591_v49  ;;  %v594_v51 = vpop.f32.mrb[2].mxu1 }
 0x29f   :  { %v595_v52 = vpop.f32.mrb[3].mxu1 }
 0x2a0   :  { %v517_v53 = vadd.f32 %v593_v44, %v558_v50 }
 0x2a2   :  { %523 = vst.msk [vmem:[#allocation10] sm:$0xff] %vm522_vm0, %v517_v53 }
 0x2a3   :  { %766 = shalt.err (!%p763_p8)
}
 0x2a4   :  { %s767_s6 = scalar_lea.hbm %s936_s7, 128 }
 0x2a5   :  { %p768_p9 = scmp.ne.s32.totalorder %s936_s7, %s767_s6  ;;  %p771_p10 = scmp.lt.u32.totalorder %s767_s6, %s936_s7 }
 0x2a7   :  { %p773_p11 = pnand %p771_p10, %p768_p9 }
 0x2a9   :  { %776 = shalt.err (!%p773_p11)
}
 0x2aa   :  { %533 = dma.vmem_to_hbm [thread:$0]  %s531_s30, 128, %s936_s7, [#allocation4]  }
 0x2ab   :  { %783 = dma.done.wait [#allocation4], 128  }
 0x2ac   :  { %784 = vsyncadd [#allocation4], 4294967168 }
 0x2ad   :  { %537 = vsyncpa [#allocation3], 1 }
 0x2ae   :  { %538 = vsyncpa [#allocation6], 1 }
 0x2af   :  { %539 = vsyncpa [#allocation9], 1 }
 0x2b0   :  { %540 = vsyncpa [#allocation4], 1 }

</bundles_post_ra>
